<compile_context>
chip_gen: v7x
topology: tpu7x:2x2x1
jax: 0.10.0
libtpu: 0.0.40
codegen_flags: <defaults>
</compile_context>

<pallas_src>
import numpy as np
import jax
import jax.numpy as jnp
from jax.experimental import pallas as pl
from jax.experimental.pallas import tpu as pltpu


# ---------------------------------------------------------------------------
# Fused kernel: conv1x1+BN (inp), conv1x1+BN+h_sigmoid (sig), bilinear
# upsample via interpolation-matrix matmul, gating multiply.
#
#   xl_ref : (1, C, tS)    x_l spatial tile (NCHW flattened, spatial on lanes)
#   xh_ref : (1, C, Sh)    full low-res slab for this batch (Sh = Hh*Wh)
#   w1/b1  : (O, C)/(O, 1) folded conv+BN of fuse1
#   w2/b2  : (O, C)/(O, 1) folded conv+BN of fuse2
#   rt_ref : (Sh, tS)      kron(Rh, Rw)^T column-slab for this spatial tile
#   o_ref  : (1, O, tS)    output tile (already NCHW-flat)
# ---------------------------------------------------------------------------
def _fuse_block_kernel(xl_ref, xh_ref, w1_ref, b1_ref, w2_ref, b2_ref,
                       rt_ref, o_ref):
    xl = xl_ref[0]                                   # (C, tS)
    xh = xh_ref[0]                                   # (C, Sh)

    # fuse1: 1x1 conv + folded BN (no activation) -> (O, tS)
    inp = jnp.dot(w1_ref[...], xl, preferred_element_type=jnp.float32)
    inp = inp + b1_ref[...]

    # fuse2: 1x1 conv + folded BN + h_sigmoid on the low-res branch -> (O, Sh)
    # (tiny: K = C, N = Sh; recomputing per spatial tile is negligible and
    #  keeps every grid iteration independent / fully parallel)
    sig = jnp.dot(w2_ref[...], xh, preferred_element_type=jnp.float32)
    sig = sig + b2_ref[...]
    sig = jnp.clip(sig + 3.0, 0.0, 6.0) * (1.0 / 6.0)   # h_sigmoid

    # bilinear upsample of this spatial tile: (O, Sh) @ (Sh, tS) -> (O, tS)
    up = jnp.dot(sig, rt_ref[...], preferred_element_type=jnp.float32)

    o_ref[0] = (inp * up).astype(o_ref.dtype)


def _round_up(x, m):
    return ((x + m - 1) // m) * m


def _pick_spatial_tile(S, C, Sh, O, budget_bytes=8 << 20, max_tile=4096):
    """Pick a lane-aligned spatial tile size (multiple of 128) and padded S."""
    # f32 bytes per spatial column for the double-buffered tiles that scale
    # with tS: x_l tile (C rows) + Rt tile (Sh rows) + output tile (O rows).
    per_col = 4 * (C + Sh + O) * 2
    max_cols = max(128, (budget_bytes // per_col) // 128 * 128)
    t_s = min(_round_up(S, 128), max_cols, max_tile)
    s_pad = _round_up(S, t_s)
    return t_s, s_pad


def _fused_fuse_block(xl_flat, xh_flat, w1, b1, w2, b2, rt, t_s):
    """xl_flat: (B, C, Sp)  xh_flat: (B, C, Sh)  rt: (Sh, Sp)  -> (B, O, Sp)."""
    B, C, Sp = xl_flat.shape
    Sh = xh_flat.shape[2]
    O = w1.shape[0]
    n_tiles = Sp // t_s

    return pl.pallas_call(
        _fuse_block_kernel,
        out_shape=jax.ShapeDtypeStruct((B, O, Sp), jnp.float32),
        grid_spec=pltpu.PrefetchScalarGridSpec(
            num_scalar_prefetch=0,
            # batch innermost so the (larger) Rt slab stays resident across B.
            grid=(n_tiles, B),
            in_specs=[
                pl.BlockSpec((1, C, t_s), lambda j, b: (b, 0, j)),
                pl.BlockSpec((1, C, Sh), lambda j, b: (b, 0, 0)),
                pl.BlockSpec((O, C), lambda j, b: (0, 0)),
                pl.BlockSpec((O, 1), lambda j, b: (0, 0)),
                pl.BlockSpec((O, C), lambda j, b: (0, 0)),
                pl.BlockSpec((O, 1), lambda j, b: (0, 0)),
                pl.BlockSpec((Sh, t_s), lambda j, b: (0, j)),
            ],
            out_specs=pl.BlockSpec((1, O, t_s), lambda j, b: (b, 0, j)),
        ),
        compiler_params=pltpu.CompilerParams(
            dimension_semantics=("parallel", "parallel"),
            vmem_limit_bytes=32 * 1024 * 1024,
        ),
    )(xl_flat, xh_flat, w1, b1, w2, b2, rt)


# ---------------------------------------------------------------------------
# Glue: BN folding, bilinear interpolation matrices (align_corners=False,
# PyTorch semantics), spatial flattening / padding (no transposes).
# ---------------------------------------------------------------------------
def fold_bn_into_conv1x1(conv_w, gamma, beta, mean, var, eps=1e-5):
    """conv_w: (O, C).  Returns w_eff (O, C), b_eff (O,)."""
    scale = gamma / jnp.sqrt(var + eps)
    w_eff = conv_w * scale[:, None]
    b_eff = beta - mean * scale
    return w_eff.astype(jnp.float32), b_eff.astype(jnp.float32)


def bilinear_matrix(in_size, out_size):
    """Row-interp matrix R (out, in), PyTorch bilinear align_corners=False."""
    if in_size == out_size:
        return np.eye(out_size, dtype=np.float64)
    scale = in_size / out_size
    dst = np.arange(out_size, dtype=np.float64)
    src = scale * (dst + 0.5) - 0.5
    src = np.maximum(src, 0.0)                     # PyTorch clamps negative src
    i0 = np.minimum(np.floor(src).astype(np.int64), in_size - 1)
    i1 = np.minimum(i0 + 1, in_size - 1)
    w1 = src - i0
    w0 = 1.0 - w1
    m = np.zeros((out_size, in_size), dtype=np.float64)
    m[np.arange(out_size), i0] += w0
    m[np.arange(out_size), i1] += w1
    return m


def fuse_block_multi(x_l, x_h, params):
    """x_l, x_h: NCHW float32.  Returns NCHW float32."""
    B, C, H, W = x_l.shape
    _, _, Hh, Wh = x_h.shape
    O = params["w1"].shape[0]
    S, Sh = H * W, Hh * Wh

    # Bilinear upsample as one matrix: up_flat = sig_flat @ Rt,
    # Rt = kron(Rh, Rw)^T with shape (Hh*Wh, H*W).
    rh = bilinear_matrix(Hh, H)                    # (H, Hh)
    rw = bilinear_matrix(Wh, W)                    # (W, Wh)
    rt_np = np.kron(rh, rw).T                      # (Sh, S)

    t_s, s_pad = _pick_spatial_tile(S, C, Sh, O)

    xl_flat = x_l.reshape(B, C, S)
    xh_flat = x_h.reshape(B, C, Sh)
    if s_pad != S:
        xl_flat = jnp.pad(xl_flat, ((0, 0), (0, 0), (0, s_pad - S)))
        rt_np = np.pad(rt_np, ((0, 0), (0, s_pad - S)))
    rt = jnp.asarray(rt_np, dtype=jnp.float32)

    out_flat = _fused_fuse_block(
        xl_flat, xh_flat,
        params["w1"], params["b1"].reshape(O, 1),
        params["w2"], params["b2"].reshape(O, 1),
        rt, t_s)

    out_flat = out_flat[:, :, :S]
    return out_flat.reshape(B, O, H, W)


def make_params(key, c_in, c_out):
    """Deterministic synthetic weights for fuse1/fuse2 (conv1x1 + BN, eval)."""
    k1, k2 = jax.random.split(key, 2)
    conv1_w = 0.1 * jax.random.normal(k1, (c_out, c_in), dtype=jnp.float32)
    conv2_w = 0.1 * jax.random.normal(k2, (c_out, c_in), dtype=jnp.float32)
    gamma1 = jnp.linspace(0.8, 1.2, c_out, dtype=jnp.float32)
    beta1 = jnp.linspace(-0.1, 0.1, c_out, dtype=jnp.float32)
    mean1 = jnp.linspace(-0.05, 0.05, c_out, dtype=jnp.float32)
    var1 = jnp.linspace(0.9, 1.1, c_out, dtype=jnp.float32)
    gamma2 = jnp.linspace(1.1, 0.9, c_out, dtype=jnp.float32)
    beta2 = jnp.linspace(0.05, -0.05, c_out, dtype=jnp.float32)
    mean2 = jnp.linspace(0.02, -0.02, c_out, dtype=jnp.float32)
    var2 = jnp.linspace(1.05, 0.95, c_out, dtype=jnp.float32)
    w1, b1 = fold_bn_into_conv1x1(conv1_w, gamma1, beta1, mean1, var1)
    w2, b2 = fold_bn_into_conv1x1(conv2_w, gamma2, beta2, mean2, var2)
    return {"w1": w1, "b1": b1, "w2": w2, "b2": b2}


def _reference(x_l, x_h, params, rh, rw):
    """Pure-JAX reference using the same interpolation matrices."""
    w1, b1 = params["w1"], params["b1"]
    w2, b2 = params["w2"], params["b2"]
    inp = jnp.einsum("oc,bchw->bohw", w1, x_l) + b1[None, :, None, None]
    sig = jnp.einsum("oc,bchw->bohw", w2, x_h) + b2[None, :, None, None]
    sig = jnp.clip(sig + 3.0, 0.0, 6.0) / 6.0
    rh_j = jnp.asarray(rh, jnp.float32)
    rw_j = jnp.asarray(rw, jnp.float32)
    up = jnp.einsum("yi,bois,xs->boyx", rh_j, sig, rw_j)
    return inp * up


if __name__ == "__main__":
    key = jax.random.PRNGKey(0)
    k_xl, k_xh, k_p = jax.random.split(key, 3)

    B, C_IN, C_OUT = 2, 4, 8
    H, W = 16, 16        # high-resolution branch x_l
    Hh, Wh = 8, 8        # low-resolution branch x_h (gets upsampled to HxW)

    x_l = jax.random.normal(k_xl, (B, C_IN, H, W), dtype=jnp.float32)
    x_h = jax.random.normal(k_xh, (B, C_IN, Hh, Wh), dtype=jnp.float32)
    params = make_params(k_p, C_IN, C_OUT)

    out = fuse_block_multi(x_l, x_h, params)
    out = jax.block_until_ready(out)

    assert out.shape == (B, C_OUT, H, W)
    assert bool(jnp.all(jnp.isfinite(out)))

    # Correctness check against a pure-JAX reference (loose tolerance: MXU
    # f32 matmuls may be multi-pass bf16 depending on generation/precision).
    ref = _reference(x_l, x_h, params, bilinear_matrix(Hh, H),
                     bilinear_matrix(Wh, W))
    np.testing.assert_allclose(np.asarray(out), np.asarray(ref),
                               rtol=2e-2, atol=2e-2)

    print("KERNEL_OK")
</pallas_src>

<mosaic_0001>
module attributes {stable_mosaic.version = 11 : i64} {
  func.func @_fuse_block_kernel(%arg0: i32, %arg1: i32, %arg2: memref<1x4x256xf32, #tpu.memory_space<vmem>>, %arg3: memref<1x4x64xf32, #tpu.memory_space<vmem>>, %arg4: memref<8x4xf32, #tpu.memory_space<vmem>>, %arg5: memref<8x1xf32, #tpu.memory_space<vmem>>, %arg6: memref<8x4xf32, #tpu.memory_space<vmem>>, %arg7: memref<8x1xf32, #tpu.memory_space<vmem>>, %arg8: memref<64x256xf32, #tpu.memory_space<vmem>>, %arg9: memref<1x8x256xf32, #tpu.memory_space<vmem>>) attributes {dimension_semantics = [#tpu.dimension_semantics<parallel>, #tpu.dimension_semantics<parallel>], iteration_bounds = array<i64: 1, 2>, scalar_prefetch = 0 : i64, scratch_operands = 0 : i64, tpu.core_type = #tpu.core_type<tc>, window_params = [{transform_indices = @transform_0, window_bounds = array<i64: 1, 4, 256>}, {transform_indices = @transform_1, window_bounds = array<i64: 1, 4, 64>}, {pipeline_mode = #tpu.pipeline_mode<synchronous>, transform_indices = @transform_2, window_bounds = array<i64: 8, 4>}, {pipeline_mode = #tpu.pipeline_mode<synchronous>, transform_indices = @transform_3, window_bounds = array<i64: 8, 1>}, {pipeline_mode = #tpu.pipeline_mode<synchronous>, transform_indices = @transform_4, window_bounds = array<i64: 8, 4>}, {pipeline_mode = #tpu.pipeline_mode<synchronous>, transform_indices = @transform_5, window_bounds = array<i64: 8, 1>}, {transform_indices = @transform_6, window_bounds = array<i64: 64, 256>}, {transform_indices = @transform_7, window_bounds = array<i64: 1, 8, 256>}]} {
    %c0 = arith.constant 0 : index
    %c0_0 = arith.constant 0 : index
    %c0_1 = arith.constant 0 : index
    %0 = vector.load %arg2[%c0, %c0_0, %c0_1] : memref<1x4x256xf32, #tpu.memory_space<vmem>>, vector<1x4x256xf32>
    %1 = vector.shape_cast %0 : vector<1x4x256xf32> to vector<4x256xf32>
    %c0_2 = arith.constant 0 : index
    %c0_3 = arith.constant 0 : index
    %c0_4 = arith.constant 0 : index
    %2 = vector.load %arg3[%c0_2, %c0_3, %c0_4] : memref<1x4x64xf32, #tpu.memory_space<vmem>>, vector<1x4x64xf32>
    %3 = vector.shape_cast %2 : vector<1x4x64xf32> to vector<4x64xf32>
    %c0_5 = arith.constant 0 : index
    %c0_6 = arith.constant 0 : index
    %4 = vector.load %arg4[%c0_5, %c0_6] : memref<8x4xf32, #tpu.memory_space<vmem>>, vector<8x4xf32>
    %cst = arith.constant dense<0.000000e+00> : vector<8x256xf32>
    %5 = tpu.matmul %4, %1, %cst {dimension_numbers = #tpu.dot_dimension_numbers<[1], [0], [0], [1], [0, 0, 1, 1], [], []>} : vector<8x4xf32>, vector<4x256xf32>, vector<8x256xf32> -> vector<8x256xf32>
    %c0_7 = arith.constant 0 : index
    %c0_8 = arith.constant 0 : index
    %6 = vector.load %arg5[%c0_7, %c0_8] : memref<8x1xf32, #tpu.memory_space<vmem>>, vector<8x1xf32>
    %7 = vector.broadcast %6 : vector<8x1xf32> to vector<8x256xf32>
    %8 = arith.addf %5, %7 : vector<8x256xf32>
    %c0_9 = arith.constant 0 : index
    %c0_10 = arith.constant 0 : index
    %9 = vector.load %arg6[%c0_9, %c0_10] : memref<8x4xf32, #tpu.memory_space<vmem>>, vector<8x4xf32>
    %cst_11 = arith.constant dense<0.000000e+00> : vector<8x64xf32>
    %10 = tpu.matmul %9, %3, %cst_11 {dimension_numbers = #tpu.dot_dimension_numbers<[1], [0], [0], [1], [0, 0, 1, 1], [], []>} : vector<8x4xf32>, vector<4x64xf32>, vector<8x64xf32> -> vector<8x64xf32>
    %c0_12 = arith.constant 0 : index
    %c0_13 = arith.constant 0 : index
    %11 = vector.load %arg7[%c0_12, %c0_13] : memref<8x1xf32, #tpu.memory_space<vmem>>, vector<8x1xf32>
    %12 = vector.broadcast %11 : vector<8x1xf32> to vector<8x64xf32>
    %13 = arith.addf %10, %12 : vector<8x64xf32>
    %cst_14 = arith.constant 3.000000e+00 : f32
    %14 = vector.broadcast %cst_14 : f32 to vector<8x64xf32>
    %15 = arith.addf %13, %14 : vector<8x64xf32>
    %cst_15 = arith.constant 0.000000e+00 : f32
    %cst_16 = arith.constant 6.000000e+00 : f32
    %16 = vector.broadcast %cst_15 : f32 to vector<8x64xf32>
    %17 = arith.maximumf %16, %15 : vector<8x64xf32>
    %18 = vector.broadcast %cst_16 : f32 to vector<8x64xf32>
    %19 = arith.minimumf %18, %17 : vector<8x64xf32>
    %cst_17 = arith.constant 0.166666672 : f32
    %20 = vector.broadcast %cst_17 : f32 to vector<8x64xf32>
    %21 = arith.mulf %19, %20 : vector<8x64xf32>
    %c0_18 = arith.constant 0 : index
    %c0_19 = arith.constant 0 : index
    %22 = vector.load %arg8[%c0_18, %c0_19] : memref<64x256xf32, #tpu.memory_space<vmem>>, vector<64x256xf32>
    %cst_20 = arith.constant dense<0.000000e+00> : vector<8x256xf32>
    %23 = tpu.matmul %21, %22, %cst_20 {dimension_numbers = #tpu.dot_dimension_numbers<[1], [0], [0], [1], [0, 0, 1, 1], [], []>} : vector<8x64xf32>, vector<64x256xf32>, vector<8x256xf32> -> vector<8x256xf32>
    %24 = arith.mulf %8, %23 : vector<8x256xf32>
    %c0_21 = arith.constant 0 : index
    %c0_22 = arith.constant 0 : index
    %c0_23 = arith.constant 0 : index
    %25 = vector.load %arg9[%c0_21, %c0_22, %c0_23] : memref<1x8x256xf32, #tpu.memory_space<vmem>>, vector<1x8x256xf32>
    %26 = vector.shape_cast %25 : vector<1x8x256xf32> to vector<8x256xf32>
    %27 = vector.shape_cast %24 : vector<8x256xf32> to vector<1x8x256xf32>
    tpu.vector_store %arg9[%c0_21, %c0_22, %c0_23], %27 {strides = array<i32>} : memref<1x8x256xf32, #tpu.memory_space<vmem>>, vector<1x8x256xf32>,
    return
  }
  func.func @transform_0(%arg0: i32, %arg1: i32) -> (i32, i32, i32) {
    %c0_i32 = arith.constant 0 : i32
    %c0_i32_0 = arith.constant 0 : i32
    return %arg1, %c0_i32, %arg0 : i32, i32, i32
  }
  func.func @transform_1(%arg0: i32, %arg1: i32) -> (i32, i32, i32) {
    %c0_i32 = arith.constant 0 : i32
    %c0_i32_0 = arith.constant 0 : i32
    %c0_i32_1 = arith.constant 0 : i32
    return %arg1, %c0_i32, %c0_i32_0 : i32, i32, i32
  }
  func.func @transform_2(%arg0: i32, %arg1: i32) -> (i32, i32) {
    %c0_i32 = arith.constant 0 : i32
    %c0_i32_0 = arith.constant 0 : i32
    %c0_i32_1 = arith.constant 0 : i32
    return %c0_i32, %c0_i32_0 : i32, i32
  }
  func.func @transform_3(%arg0: i32, %arg1: i32) -> (i32, i32) {
    %c0_i32 = arith.constant 0 : i32
    %c0_i32_0 = arith.constant 0 : i32
    %c0_i32_1 = arith.constant 0 : i32
    return %c0_i32, %c0_i32_0 : i32, i32
  }
  func.func @transform_4(%arg0: i32, %arg1: i32) -> (i32, i32) {
    %c0_i32 = arith.constant 0 : i32
    %c0_i32_0 = arith.constant 0 : i32
    %c0_i32_1 = arith.constant 0 : i32
    return %c0_i32, %c0_i32_0 : i32, i32
  }
  func.func @transform_5(%arg0: i32, %arg1: i32) -> (i32, i32) {
    %c0_i32 = arith.constant 0 : i32
    %c0_i32_0 = arith.constant 0 : i32
    %c0_i32_1 = arith.constant 0 : i32
    return %c0_i32, %c0_i32_0 : i32, i32
  }
  func.func @transform_6(%arg0: i32, %arg1: i32) -> (i32, i32) {
    %c0_i32 = arith.constant 0 : i32
    %c0_i32_0 = arith.constant 0 : i32
    return %c0_i32, %arg0 : i32, i32
  }
  func.func @transform_7(%arg0: i32, %arg1: i32) -> (i32, i32, i32) {
    %c0_i32 = arith.constant 0 : i32
    %c0_i32_0 = arith.constant 0 : i32
    return %arg1, %c0_i32, %arg0 : i32, i32, i32
  }
}

</mosaic_0001>

<bundles_post_ra>
// kernel: tpu_custom_call.1
= control target key start
LH: loop header
LB: loop body
LE: loop exit
PB: predicated region body
PF: predicated region fallthrough
CT: control target
= control target key end

     0   :  { %12 = vsyncpa [#allocation3], 0  ;;  %s1190_s0 = inlined_call_operand.vmem [shape: f32[2,4,256], index: 0, kind: input, shape index: {}]   ;;  %s1191_s1 = inlined_call_operand.vmem [shape: f32[2,4,64], index: 1, kind: input, shape index: {}]   ;;  %s1192_s2 = inlined_call_operand.vmem [shape: f32[8,4], index: 2, kind: input, shape index: {}]   ;;  %s1193_s3 = inlined_call_operand.vmem [shape: f32[8,1], index: 3, kind: input, shape index: {}]   ;;  %s1194_s4 = inlined_call_operand.vmem [shape: f32[8,4], index: 4, kind: input, shape index: {}]   ;;  %s1195_s5 = inlined_call_operand.vmem [shape: f32[8,1], index: 5, kind: input, shape index: {}]   ;;  %s1196_s6 = inlined_call_operand.hbm [shape: f32[64,256], index: 6, kind: input, shape index: {}]   ;;  %s1197_s7 = inlined_call_operand.hbm [shape: f32[2,8,256], index: 7, kind: output, shape index: {}]  }
   0x1   :  { %13 = vsyncpa [#allocation4], 0 }
   0x2   :  { %15 = vsyncpa [#allocation4 + $0x1], 0  ;;  %s1020_s24 = smov 0   ;;  %s1022_s25 = smov 0  }
   0x3   :  { %s1024_s26 = smov 0   ;;  %s1026_s27 = smov 0  }
   0x4   :  { %s1028_s28 = smov 0   ;;  %s1030_s29 = smov 0  }
   0x5 LB: > { %s741_s30 = sadd.s32 4294967295, %s971_s29   ;;  %s742_s8 = sadd.s32 4294967294, %s971_s29   ;;  %s971_s29 = sphi %s1030_s29, %s21_s29   ;;  %s967_s28 = sphi %s1028_s28, %s1215_s28   ;;  %s963_s27 = sphi %s1026_s27, %s1214_s27   ;;  %s959_s26 = sphi %s1024_s26, %s1213_s26   ;;  %s955_s25 = sphi %s1022_s25, %s1212_s25   ;;  %s951_s24 = sphi %s1020_s24, %s1211_s24  }
   0x6   : > { %s30_s9 = sadd.s32 1, %s967_s28  ;;  %s206_s10 = sadd.s32 1, %s959_s26 }
   0x7   : > { %p31_p0 = scmp.ge.s32.totalorder %s30_s9, 2  ;;  %p216_p1 = scmp.ne.s32.totalorder %s959_s26, %s955_s25 }
   0x8   : > { %p217_p2 = scmp.eq.s32.totalorder %s741_s30, 1  ;;  %p222_p3 = scmp.ne.s32.totalorder %s955_s25, %s951_s24 }
   0x9   : > { %s1217_s9 = smov (%p31_p0, %s30_s9), 0  ;;  %p223_p5 = scmp.eq.s32.totalorder %s742_s8, 1 }
   0xa   : > { %p1060_p4 = por %p217_p2, %p216_p1  ;;  %s201_s12 = ssub.s32 %s967_s28, %s1217_s9 }
   0xb   : > { %p743_p6 = scmp.ge.s32.totalorder %s971_s29, 1  ;;  %p204_p7 = scmp.eq.s32.totalorder %s201_s12, 0 }
   0xc   : > { %s1202_s11 = scalar_select %p1060_p4, 1, 0 }
   0xd   : > { %p1067_p8 = por %p223_p5, %p222_p3  ;;  %p230_p9 = scmp.lt.s32.totalorder %s971_s29, 3 }
   0xe   : > { %s1073_s14 = scalar_select %p204_p7, %s959_s26, %s206_s10  }
   0xf   : > { %s1203_s13 = scalar_select %p1067_p8, 1, 0 }
  0x10   : > { %p1075_p10 = pnand %p743_p6, %p230_p9  ;;  %p1079_p11 = scmp.eq.s32.totalorder %s741_s30, 0 }
  0x11   : > { %s973_s17 = smov [#allocation2]   ;;  %s861_s22 = scalar_lea.hbm %s1196_s6, 2048 }
  0x12   : > { %s1204_s15 = scalar_select %p1075_p10, 1, 0 }
  0x13   : > { %s1205_s16 = scalar_select %p1079_p11, 1, 0 }
  0x14   : > { %p794_p12 = pneg %p1075_p10  ;;  %s257_s18 = sshll.u32 %s973_s17, 4  ;;  %s258_s18 = int_to_ptr.vmem [resolvable:$true] %s257_s18 }
  0x15   : > { %p862_p0 = scmp.ne.s32.totalorder %s1196_s6, %s861_s22  ;;  %p868_p5 = scmp.lt.u32.totalorder %s861_s22, %s1196_s6 }
  0x16   : > { %p1087_p13 = pnand %p1079_p11, %p794_p12 }
  0x18   : > { %p863_p1 = pneg %p1087_p13 }
  0x1a   : > { %p864_p2 = pnand %p863_p1, %p862_p0 }
  0x1c   : > { %p865_p3 = pneg %p864_p2 }
  0x1e   : > { %p870_p6 = pnand %p868_p5, %p865_p3 }
  0x20   : > { %873 = shalt.err (!%p870_p6)
}
  0x21   : > { %s874_s12 = scalar_lea.vmem %s258_s18, 2048  ;;  %p882_p8 = scmp.lt.s32.totalorder %s258_s18, %s258_s18 }
  0x22   : > { %p875_p7 = scmp.ne.s32.totalorder %s258_s18, %s874_s12  ;;  %p883_p4 = scmp.lt.s32.totalorder %s874_s12, %s874_s12 }
  0x24   : > { %p877_p9 = pnand %p875_p7, %p863_p1  ;;  %p884_p11 = por %p883_p4, %p882_p8 }
  0x26   : > { %p878_p12 = pneg %p877_p9 }
  0x28   : > { %p885_p10 = pnand %p884_p11, %p878_p12 }
  0x2a   : > { %888 = shalt.err (!%p885_p10)
}
  0x2b   : > { %s974_s17 = smov 256   ;;  %s975_s20 = smov 16  }
  0x2c   : > { %797 = dma.hbm_to_vmem [thread:$0]  (!%p1087_p13), %s1196_s6, 2048, %s258_s18, [#allocation3], %s974_s17, %s974_s17, %s975_s20  }
  0x2d   : > { %p1207_p0 = scmp.ne.s32.totalorder %s1204_s15, 0 }
  0x2e   : > { %p1208_p2 = scmp.ne.s32.totalorder (!%p1207_p0), %s1205_s16, 0 }
  0x2f   : > { %293 = sbr.rel (%p1207_p0) target bundleno = 521 (0x209), region = 48 }
  0x36   : > { %942 = dma.done.wait (%p1208_p2), [#allocation3], 2048  }
  0x37   : > { %944 = vsyncadd (%p1208_p2), [#allocation3], 4294965248  ;;  %p334_p4 = scmp.lt.s32.totalorder %s963_s27, 1  ;;  %v976_v0 = vmov 0.0   ;;  %v977_v1 = vmov 0   ;;  %vm364_vm0 = vcmask 1043456  }
  0x38   : > { %433 = vmatprep.mubr.f32.mxu1 %v976_v0  ;;  %611 = vmatprep.mubr.f32.mxu0 %v976_v0  ;;  %v441_v4 = vld [vmem:[%s1195_s5] sm:$0xff]  ;;  %vm360_vm1 = vcmask 31744   ;;  %v528_v6 = vld [vmem:[#allocation2 + $0x8] sm:$0xff]  ;;  %v530_v7 = vld [vmem:[#allocation2 + $0x18] sm:$0xff]  ;;  %vm978_vm2 = vmmov 0   ;;  %vm543_vm3 = vcmask 523264  }
  0x39   : > { %s335_s19 = scalar_select %p334_p4, %s963_s27, 1  ;;  %859 = vset.pattern.permute.xlu0 %v977_v1  ;;  %v351_v5 = vld [vmem:[%s1192_s2] sm:$0xff]  ;;  %v772_v9 = vpack.c.bf16 %v530_v7, %v528_v6  ;;  %v529_v13 = vld [vmem:[#allocation2 + $0x10] sm:$0xff]  ;;  %v532_v15 = vld [vmem:[#allocation2 + $0x28] sm:$0xff] }
  0x3a   : > { %444 = vperm.xlu0 %859, %v441_v4   ;;  %v352_v10 = vld [vmem:[%s1193_s3] sm:$0xff]  ;;  %v534_v16 = vld [vmem:[#allocation2 + $0x38] sm:$0xff]  ;;  %v533_v19 = vld [vmem:[#allocation2 + $0x30] sm:$0xff]  ;;  %s330_s15 = sand.u32 1, %s955_s25   ;;  %s764_s10 = sshll.u32 %s963_s27, 8 }
  0x3b   : > { %s763_s22 = sshll.u32 %s335_s19, 3  ;;  %s751_s18 = sshll.u32 %s335_s19, 2  ;;  %v440_v11 = vld [vmem:[%s1194_s4] sm:$0xff]  ;;  %773 = vmatprep.subr.bf16.mxu0 %v772_v9  ;;  %v776_v17 = vpack.c.bf16 %v534_v16, %v532_v15  ;;  %v536_v21 = vld [vmem:[#allocation2 + $0x48] sm:$0xff]  ;;  %v538_v22 = vld [vmem:[#allocation2 + $0x58] sm:$0xff] }
  0x3c   : > { %s341_s8 = scalar_lea.vmem %s1190_s0, %s763_s22  ;;  %s346_s12 = scalar_lea.vmem %s1191_s1, %s751_s18  ;;  %v527_v12 = vld [vmem:[#allocation2] sm:$0xff]  ;;  %v780_v23 = vpack.c.bf16 %v538_v22, %v536_v21  ;;  %v537_v25 = vld [vmem:[#allocation2 + $0x50] sm:$0xff]  ;;  %v540_v27 = vld [vmem:[#allocation2 + $0x68] sm:$0xff] }
  0x3d   : > { %v349_v2 = vld [vmem:[%s341_s8] sm:$0xff]  ;;  %v774_v14 = vpack.c.bf16 %v529_v13, %v527_v12  ;;  %v542_v28 = vld [vmem:[#allocation2 + $0x78] sm:$0xff]  ;;  %v541_v31 = vld [vmem:[#allocation2 + $0x70] sm:$0xff]  ;;  %s748_s8 = sshll.u32 %s330_s15, 4  ;;  %s1143_s21 = scalar_lea.hbm %s1197_s7, %s764_s10 }
  0x3e   : > { %v359_v3 = vcombine.high %v349_v2, %v349_v2  ;;  %v350_v8 = vld [vmem:[%s346_s12] sm:$0xf]  ;;  %355 = vperm.xlu0 %859, %v352_v10   ;;  %v784_v29 = vpack.c.bf16 %v542_v28, %v540_v27  ;;  %s332_s16 = scalar_lea.vmem [#allocation5], %s748_s8  ;;  %s623_s27 = scalar_lea.sflag [#allocation4], %s330_s15 }
  0x3f   : > { %775 = vmatpush1.bf16.msra.mxu0 %v774_v14  ;;  %v531_v18 = vld [vmem:[#allocation2 + $0x20] sm:$0xff]  ;;  %s639_s12 = sshll.u32 %s332_s16, 4  ;;  %p1209_p10 = scmp.ne.s32.totalorder %s1202_s11, 0  ;;  %s1145_s12 = int_to_ptr.vmem [resolvable:$true] %s639_s12 }
  0x40   : > { %752 = vmatprep.subr.msk.mxu1 %vm364_vm0, %v359_v3  ;;  %v778_v20 = vpack.c.bf16 %v533_v19, %v531_v18  ;;  %777 = vmatprep.subr.bf16.mxu0 %v776_v17  ;;  %v535_v24 = vld [vmem:[#allocation2 + $0x40] sm:$0xff]  ;;  %s889_s23 = scalar_lea.vmem %s1145_s12, 256  ;;  %s979_s19 = smov [#allocation5]  }
  0x41   : > { %753 = vmatpush1.msk.msra.mxu1 %vm364_vm0, %v349_v2  ;;  %v782_v26 = vpack.c.bf16 %v537_v25, %v535_v24  ;;  %v539_v30 = vld [vmem:[#allocation2 + $0x60] sm:$0xff]  ;;  %p890_p8 = scmp.ne.s32.totalorder %s1145_s12, %s889_s23  ;;  %s893_s22 = sshll.u32 %s979_s19, 4  ;;  %s894_s22 = int_to_ptr.vmem [resolvable:$false] %s893_s22 }
  0x42   : > { %754 = vmatmul.mubr.msk.f32.vlgmr.msra.gmra.mrb[0].mxu1 %vm360_vm1, %v351_v5  ;;  %767 = vmatprep.subr.mxu1 %v976_v0  ;;  %v786_v32 = vpack.c.bf16 %v541_v31, %v539_v30  ;;  %s895_s18 = scalar_lea.vmem %s894_s22, 512  ;;  %p896_p1 = scmp.lt.s32.totalorder %s1145_s12, %s894_s22 }
  0x43   : > { %768 = vmatpush3.msk.msra.mxu1 %vm364_vm0, %v350_v8  ;;  %769 = vmatprep.mubr.msk.f32.mxu1 %vm978_vm2, %v976_v0  ;;  %p891_p11 = pnand %p890_p8, %p1209_p10  ;;  %p897_p3 = scmp.lt.s32.totalorder %s895_s18, %s889_s23 }
  0x44   : > { %779 = vmatpush1.bf16.msra.mxu0 %v778_v20 }
  0x45   : > { %781 = vmatprep.subr.bf16.mxu0 %v780_v23  ;;  %p892_p13 = pneg %p891_p11  ;;  %p898_p5 = por %p897_p3, %p896_p1 }
  0x46   : > { %770 = vmatmul.mubr.msk.f32.vlgmr.msra.gmra.mrb[2].mxu1 %vm360_vm1, %v440_v11 }
  0x47   : > { %p899_p6 = pnand %p898_p5, %p892_p13 }
  0x48   : > { %783 = vmatpush1.bf16.msra.mxu0 %v782_v26 }
  0x49   : > { %785 = vmatprep.subr.bf16.mxu0 %v784_v29 }
  0x4c   : > { %787 = vmatpush1.bf16.msra.mxu0 %v786_v32 }
  0xb9   : > { %v445_v35 = vpop.permute.xlu0 %444 }
  0xbd   : > { %v356_v43 = vpop.permute.xlu0 %355 }
 0x115   : > { %v435_v33 = vpop.f32.mrb[0].mxu1 }
 0x116   : > { %v437_v34 = vpop.f32.mrb[1].mxu1  ;;  %v436_v44 = vadd.f32 %v435_v33, %v356_v43 }
 0x117   : > { %v438_v45 = vadd.f32 %v437_v34, %v356_v43 }
 0x119   : > { %v519_v36 = vpop.f32.mrb[2].mxu1 }
 0x11a   : > { %v520_v37 = vadd.f32 %v519_v36, %v445_v35  ;;  %v771_v38 = vpop.f32.mrb[3].mxu1 }
 0x11c   : > { %v523_v39 = vadd.f32 3.0, %v520_v37 }
 0x11e   : > { %v524_v40 = vmax.f32 %v523_v39, 0.0 }
 0x120   : > { %v525_v41 = vmin.f32 %v524_v40, 6.0 }
 0x122   : > { %v526_v42 = vmul.f32 0.16666667, %v525_v41 }
 0x124   : > { %757 = vmatmul.mubr.msk.f32.vlgmr.msra.gmra.mrb[0].mxu0 %vm543_vm3, %v526_v42 }
 0x1f7   : > { %v613_v46 = vpop.f32.mrb[0].mxu0 }
 0x1f8   : > { %v618_v47 = vmul.f32 %v613_v46, %v436_v44  ;;  %v615_v48 = vpop.f32.mrb[1].mxu0 }
 0x1f9   : > { %v619_v49 = vmul.f32 %v615_v48, %v438_v45 }
 0x1fa   : > { %620 = vst [vmem:[%s332_s16] sm:$0xff] %v618_v47 }
 0x1fb   : > { %621 = vst [vmem:[%s332_s16 + $0x8] sm:$0xff] %v619_v49 }
 0x1fc   : > { %902 = shalt.err (!%p899_p6)
}
 0x1fd   : > { %s903_s30 = scalar_lea.hbm %s1143_s21, 256  ;;  %s907_s10 = scalar_lea.hbm %s1197_s7, 512 }
 0x1fe   : > { %p904_p7 = scmp.ne.s32.totalorder %s1143_s21, %s903_s30  ;;  %p908_p0 = scmp.lt.u32.totalorder %s1143_s21, %s1197_s7 }
 0x1ff   : > { %p909_p2 = scmp.lt.u32.totalorder %s907_s10, %s903_s30  ;;  %p911_p8 = scmp.lt.u32.totalorder %s903_s30, %s1143_s21 }
 0x200   : > { %p905_p9 = pnand %p904_p7, %p1209_p10 }
 0x201   : > { %p910_p4 = por %p909_p2, %p908_p0 }
 0x202   : > { %p906_p12 = pneg %p905_p9 }
 0x203   : > { %p912_p11 = por %p911_p8, %p910_p4 }
 0x205   : > { %p913_p13 = pnand %p912_p11, %p906_p12 }
 0x207   : > { %916 = shalt.err (!%p913_p13)
}
 0x208   : > { %792 = dma.vmem_to_hbm [thread:$0]  (%p1209_p10), %s1145_s12, 256, %s1143_s21, %s623_s27  }
 0x209 PF: > { %p804_p1 = scmp.ge.s32.totalorder %s971_s29, 2  ;;  %s651_s20 = sand.u32 1, %s951_s24  }
 0x20a   : > { %p1210_p3 = scmp.ne.s32.totalorder %s1203_s13, 0  ;;  %s652_s23 = scalar_lea.sflag [#allocation4], %s651_s20 }
 0x20c   : > { %p799_p5 = pnand %p804_p1, %p1210_p3 }
 0x20e   : > { %946 = dma.done.wait (!%p799_p5), %s652_s23, 256  }
 0x20f   : > { %948 = vsyncadd (!%p799_p5), %s652_s23, 4294967040  ;;  %s21_s29 = sadd.s32 1, %s971_s29   ;;  %s1211_s24 = smov %s955_s25 }
 0x210   : > { %p18_p6 = scmp.ge.s32.totalorder %s21_s29, 4   ;;  %s1212_s25 = smov %s959_s26 }
 0x211   : > { %s1213_s26 = smov %s1073_s14  ;;  %s1214_s27 = smov %s967_s28 }
 0x212   : > { %s1215_s28 = smov %s1217_s9  ;;  %20 = sbr.rel (!%p18_p6) target bundleno = 5 (0x5), region = 92 }
 0x219   :  { %657 = vsyncpa [#allocation3], 1 }
 0x21a   :  { %659 = vsyncpa [#allocation3 + $0x1], 1 }
 0x21b   :  { %660 = vsyncpa [#allocation4], 1 }
 0x21c   :  { %662 = vsyncpa [#allocation4 + $0x1], 1 }

</bundles_post_ra>
